<compile_context>
chip_gen: v6e
topology: v6e:2x2x1
jax: 0.10.0
libtpu: 0.0.40
codegen_flags: <defaults>
</compile_context>

<pallas_src>
import jax
import jax.numpy as jnp
from jax.experimental import pallas as pl
from jax.experimental.pallas import tpu as pltpu


def _cdiv(a, b):
    return -(-a // b)


def _round_up(n, m):
    return _cdiv(n, m) * m


def _sublane_mult(dtype):
    # 8 for 32-bit, 16 for bf16, 32 for 8-bit dtypes.
    return max(8, 32 // jnp.dtype(dtype).itemsize)


def _make_kernel(has_bias):
    def kernel(x_ref, a_t_ref, b_t_ref, *rest):
        if has_bias:
            bias_ref, o_ref = rest
        else:
            (o_ref,) = rest
        x = x_ref[...]                                     # (tm, dim), native dtype
        # t = x @ A^T : A^T pre-materialised as (dim, rank) -> natural MXU layout.
        t = jnp.dot(x, a_t_ref[...],
                    preferred_element_type=jnp.float32)    # (tm, rank) f32
        # y = t @ B^T : B^T is (rank, dim), dim dense on lanes.
        y = jnp.dot(t.astype(b_t_ref.dtype), b_t_ref[...],
                    preferred_element_type=jnp.float32)    # (tm, dim) f32
        if has_bias:
            y = y + bias_ref[...]                          # promoted to f32
        y = y + x                                          # residual, promoted to f32
        o_ref[...] = y.astype(o_ref.dtype)
    return kernel


# Cache: does this JAX build accept BlockSpec(pipeline_mode=pl.Buffered(n))?
_PIPELINE_MODE_OK = {"ok": None}


def low_rank_adversary(x, lora_A_w, lora_B_w, lora_B_b=None, *,
                       tm=1024, vmem_budget_bytes=None, vmem_limit_bytes=None):
    """y = x @ A^T @ B^T (+ b) + x over the last axis of x.

    x: (..., dim). lora_A_w: (rank, dim). lora_B_w: (dim, rank). lora_B_b: (dim,) or None.
    """
    dim = x.shape[-1]
    rank = lora_A_w.shape[0]
    orig_shape = x.shape

    x2 = x.reshape(-1, dim)
    M = x2.shape[0]

    dsize = jnp.dtype(x.dtype).itemsize
    wsize = jnp.dtype(lora_A_w.dtype).itemsize
    row_mult = _sublane_mult(x.dtype)
    w_row_mult = _sublane_mult(lora_A_w.dtype)
    has_bias = lora_B_b is not None

    # ---- Generation-aware VMEM knobs (v5e/v6e: 128 MiB VMEM, v7x: 64 MiB/TC). ----
    try:
        vmem_cap = int(pltpu.get_tpu_info().vmem_capacity_bytes)
    except Exception:
        vmem_cap = 64 * 1024 * 1024        # conservative (v7x-sized) fallback
    if vmem_budget_bytes is None:
        vmem_budget_bytes = max(16 << 20, vmem_cap // 2 - (8 << 20))
    if vmem_limit_bytes is None:
        vmem_limit_bytes = min(vmem_cap - (16 << 20), vmem_budget_bytes + (16 << 20))

    # ---- Resident (grid-invariant) weight/bias VMEM blocks.  Counted with two
    #      buffers even though Buffered(1) is requested (safe for the fallback). ----
    a_t_buf = _round_up(dim, w_row_mult) * _round_up(rank, 128) * wsize
    b_t_buf = _round_up(rank, w_row_mult) * _round_up(dim, 128) * wsize
    bias_buf = w_row_mult * _round_up(dim, 128) * wsize if has_bias else 0
    resident = 2 * (a_t_buf + b_t_buf + bias_buf)

    # ---- Row tile: largest that fits the budget (x + out, double-buffered),
    #      then rebalanced so the ragged tail handled by the grid is small.
    #      If resident alone exceeds the budget, tm floors at row_mult
    #      (correct, but slow — only hits at pathological rank*dim). ----
    avail = max(0, vmem_budget_bytes - resident)
    tm_cap = max(row_mult, avail // (4 * dim * dsize))
    tm = int(min(tm, tm_cap))
    if tm >= M:
        tm = int(M)                        # single tile; block == full array dim
        grid_m = 1
    else:
        tm = max(row_mult, (tm // row_mult) * row_mult)
        grid_m = _cdiv(M, tm)
        tm = int(min(tm, _round_up(_cdiv(M, grid_m), row_mult)))   # rebalance
        grid_m = _cdiv(M, tm)

    a_t = lora_A_w.T                       # (dim, rank): one-time tiny transpose
    b_t = lora_B_w.T                       # (rank, dim): dim on lanes

    # Triple-buffer the streamed x tile when the per-step DMA is small.
    x_tile_bytes = tm * dim * dsize
    x_bufs = 3 if (grid_m > 2 and x_tile_bytes < (1 << 20)) else 2

    cost = pl.CostEstimate(
        flops=int(4 * M * dim * rank + 2 * M * dim),
        transcendentals=0,
        bytes_accessed=int(2 * M * dim * dsize + 2 * rank * dim * wsize
                           + (dim * wsize if has_bias else 0)))

    kernel = _make_kernel(has_bias)
    out_shape = jax.ShapeDtypeStruct((M, dim), x.dtype)

    operands = [x2, a_t, b_t]
    if has_bias:
        operands.append(lora_B_b.reshape(1, dim))

    def run(use_pipeline_modes):
        def spec(shape, imap, mode=None):
            if use_pipeline_modes and mode is not None:
                return pl.BlockSpec(shape, imap, pipeline_mode=mode)
            return pl.BlockSpec(shape, imap)

        in_specs = [
            spec((tm, dim), lambda i: (i, 0),
                 pl.Buffered(x_bufs) if x_bufs != 2 else None),     # streamed rows
            spec((dim, rank), lambda i: (0, 0), pl.Buffered(1)),    # resident A^T
            spec((rank, dim), lambda i: (0, 0), pl.Buffered(1)),    # resident B^T
        ]
        if has_bias:
            in_specs.append(spec((1, dim), lambda i: (0, 0), pl.Buffered(1)))

        return pl.pallas_call(
            kernel,
            out_shape=out_shape,
            grid_spec=pltpu.PrefetchScalarGridSpec(
                num_scalar_prefetch=0,
                grid=(grid_m,),
                in_specs=in_specs,
                out_specs=pl.BlockSpec((tm, dim), lambda i: (i, 0)),
            ),
            compiler_params=pltpu.CompilerParams(
                # TODO(synk): on v7x confirm this shards rows across both TCs;
                # otherwise use pltpu.CORE_PARALLEL for this axis there.
                dimension_semantics=("parallel",),
                vmem_limit_bytes=int(vmem_limit_bytes)),
            cost_estimate=cost,
        )(*operands)

    if _PIPELINE_MODE_OK["ok"] is False:
        out = run(False)
    else:
        try:
            out = run(True)
            _PIPELINE_MODE_OK["ok"] = True
        except Exception:
            _PIPELINE_MODE_OK["ok"] = False
            out = run(False)

    return out.reshape(orig_shape)


if __name__ == "__main__":
    # Small shapes consistent with the module's forward (Linear over last dim).
    batch, seq, dim, rank = 2, 8, 128, 8

    key = jax.random.PRNGKey(0)
    kx, ka, kb, kbias = jax.random.split(key, 4)

    x = jax.random.normal(kx, (batch, seq, dim), dtype=jnp.float32)

    # zero_init=False / bias=True so the hot path is exercised; with
    # zero_init=True (PyTorch default) lora_B.weight == 0 and output == x.
    lora_A_w = jax.random.normal(ka, (rank, dim), jnp.float32) * (1.0 / dim) ** 0.5
    lora_B_w = jax.random.normal(kb, (dim, rank), jnp.float32) * (1.0 / rank) ** 0.5
    lora_B_b = jax.random.normal(kbias, (dim,), jnp.float32) * 0.01

    out = jax.block_until_ready(low_rank_adversary(x, lora_A_w, lora_B_w, lora_B_b))
    ref = x @ lora_A_w.T @ lora_B_w.T + lora_B_b + x
    assert out.shape == x.shape
    assert jnp.allclose(out, ref, atol=1e-5, rtol=1e-5), "mismatch vs reference"

    # zero_init=True semantics: output == x.
    out_zero = jax.block_until_ready(
        low_rank_adversary(x, lora_A_w, jnp.zeros((dim, rank), jnp.float32), None))
    assert jnp.allclose(out_zero, x, atol=1e-6), "zero_init path should be identity"

    # Ragged M handled entirely by the grid (no jnp.pad / out-slice):
    # M=15 with tm=8 -> 2 grid steps, last block masked.
    x_r = jax.random.normal(kx, (3, 5, dim), dtype=jnp.float32)
    out_r = jax.block_until_ready(
        low_rank_adversary(x_r, lora_A_w, lora_B_w, lora_B_b, tm=8))
    ref_r = x_r @ lora_A_w.T @ lora_B_w.T + lora_B_b + x_r
    assert jnp.allclose(out_r, ref_r, atol=1e-5, rtol=1e-5), "ragged-M mismatch"

    # Multi-step grid with small tiles: exercises Buffered(3)/Buffered(1)
    # pipeline modes (falls back to plain specs if this build rejects them).
    x_m = jax.random.normal(kx, (4, 16, dim), dtype=jnp.float32)
    out_m = jax.block_until_ready(
        low_rank_adversary(x_m, lora_A_w, lora_B_w, lora_B_b, tm=16))
    ref_m = x_m @ lora_A_w.T @ lora_B_w.T + lora_B_b + x_m
    assert jnp.allclose(out_m, ref_m, atol=1e-5, rtol=1e-5), "multi-tile mismatch"

    # bf16 inputs take the native-dtype MXU path (f32 accumulate, one downcast).
    xb, Ab, Bb, bb = (x.astype(jnp.bfloat16), lora_A_w.astype(jnp.bfloat16),
                      lora_B_w.astype(jnp.bfloat16), lora_B_b.astype(jnp.bfloat16))
    out_b = jax.block_until_ready(low_rank_adversary(xb, Ab, Bb, bb))
    ref_b = (xb.astype(jnp.float32) @ Ab.astype(jnp.float32).T @ Bb.astype(jnp.float32).T
             + bb.astype(jnp.float32) + xb.astype(jnp.float32))
    assert jnp.allclose(out_b.astype(jnp.float32), ref_b, atol=5e-2, rtol=5e-2), \
        "bf16 path mismatch"

    print("KERNEL_OK")
</pallas_src>

<mosaic_0001>
module attributes {stable_mosaic.version = 11 : i64} {
  func.func @kernel(%arg0: i32, %arg1: memref<16x128xf32, #tpu.memory_space<vmem>>, %arg2: memref<128x8xf32, #tpu.memory_space<vmem>>, %arg3: memref<8x128xf32, #tpu.memory_space<vmem>>, %arg4: memref<1x128xf32, #tpu.memory_space<vmem>>, %arg5: memref<16x128xf32, #tpu.memory_space<vmem>>) attributes {dimension_semantics = [#tpu.dimension_semantics<parallel>], iteration_bounds = array<i64: 1>, scalar_prefetch = 0 : i64, scratch_operands = 0 : i64, tpu.core_type = #tpu.core_type<tc>, window_params = [{transform_indices = @transform_0, window_bounds = array<i64: 16, 128>}, {pipeline_mode = #tpu.pipeline_mode<synchronous>, transform_indices = @transform_1, window_bounds = array<i64: 128, 8>}, {pipeline_mode = #tpu.pipeline_mode<synchronous>, transform_indices = @transform_2, window_bounds = array<i64: 8, 128>}, {pipeline_mode = #tpu.pipeline_mode<synchronous>, transform_indices = @transform_3, window_bounds = array<i64: 1, 128>}, {transform_indices = @transform_4, window_bounds = array<i64: 16, 128>}]} {
    %c0 = arith.constant 0 : index
    %c0_0 = arith.constant 0 : index
    %0 = vector.load %arg1[%c0, %c0_0] : memref<16x128xf32, #tpu.memory_space<vmem>>, vector<16x128xf32>
    %c0_1 = arith.constant 0 : index
    %c0_2 = arith.constant 0 : index
    %1 = vector.load %arg2[%c0_1, %c0_2] : memref<128x8xf32, #tpu.memory_space<vmem>>, vector<128x8xf32>
    %cst = arith.constant dense<0.000000e+00> : vector<16x8xf32>
    %2 = tpu.matmul %0, %1, %cst {dimension_numbers = #tpu.dot_dimension_numbers<[1], [0], [0], [1], [0, 0, 1, 1], [], []>} : vector<16x128xf32>, vector<128x8xf32>, vector<16x8xf32> -> vector<16x8xf32>
    %c0_3 = arith.constant 0 : index
    %c0_4 = arith.constant 0 : index
    %3 = vector.load %arg3[%c0_3, %c0_4] : memref<8x128xf32, #tpu.memory_space<vmem>>, vector<8x128xf32>
    %cst_5 = arith.constant dense<0.000000e+00> : vector<16x128xf32>
    %4 = tpu.matmul %2, %3, %cst_5 {dimension_numbers = #tpu.dot_dimension_numbers<[1], [0], [0], [1], [0, 0, 1, 1], [], []>} : vector<16x8xf32>, vector<8x128xf32>, vector<16x128xf32> -> vector<16x128xf32>
    %c0_6 = arith.constant 0 : index
    %c0_7 = arith.constant 0 : index
    %5 = vector.load %arg4[%c0_6, %c0_7] : memref<1x128xf32, #tpu.memory_space<vmem>>, vector<1x128xf32>
    %6 = vector.broadcast %5 : vector<1x128xf32> to vector<16x128xf32>
    %7 = arith.addf %4, %6 : vector<16x128xf32>
    %8 = arith.addf %7, %0 : vector<16x128xf32>
    %c0_8 = arith.constant 0 : index
    %c0_9 = arith.constant 0 : index
    %9 = vector.load %arg5[%c0_8, %c0_9] : memref<16x128xf32, #tpu.memory_space<vmem>>, vector<16x128xf32>
    tpu.vector_store %arg5[%c0_8, %c0_9], %8 {strides = array<i32>} : memref<16x128xf32, #tpu.memory_space<vmem>>, vector<16x128xf32>,
    return
  }
  func.func @transform_0(%arg0: i32) -> (i32, i32) {
    %c0_i32 = arith.constant 0 : i32
    %c0_i32_0 = arith.constant 0 : i32
    return %arg0, %c0_i32 : i32, i32
  }
  func.func @transform_1(%arg0: i32) -> (i32, i32) {
    %c0_i32 = arith.constant 0 : i32
    %c0_i32_0 = arith.constant 0 : i32
    %c0_i32_1 = arith.constant 0 : i32
    return %c0_i32, %c0_i32_0 : i32, i32
  }
  func.func @transform_2(%arg0: i32) -> (i32, i32) {
    %c0_i32 = arith.constant 0 : i32
    %c0_i32_0 = arith.constant 0 : i32
    %c0_i32_1 = arith.constant 0 : i32
    return %c0_i32, %c0_i32_0 : i32, i32
  }
  func.func @transform_3(%arg0: i32) -> (i32, i32) {
    %c0_i32 = arith.constant 0 : i32
    %c0_i32_0 = arith.constant 0 : i32
    %c0_i32_1 = arith.constant 0 : i32
    return %c0_i32, %c0_i32_0 : i32, i32
  }
  func.func @transform_4(%arg0: i32) -> (i32, i32) {
    %c0_i32 = arith.constant 0 : i32
    %c0_i32_0 = arith.constant 0 : i32
    return %arg0, %c0_i32 : i32, i32
  }
}

module attributes {stable_mosaic.version = 11 : i64} {
  func.func @kernel(%arg0: i32, %arg1: memref<16x128xf32, #tpu.memory_space<vmem>>, %arg2: memref<128x8xf32, #tpu.memory_space<vmem>>, %arg3: memref<8x128xf32, #tpu.memory_space<vmem>>, %arg4: memref<1x128xf32, #tpu.memory_space<vmem>>, %arg5: memref<16x128xf32, #tpu.memory_space<vmem>>) attributes {dimension_semantics = [#tpu.dimension_semantics<parallel>], iteration_bounds = array<i64: 1>, scalar_prefetch = 0 : i64, scratch_operands = 0 : i64, tpu.core_type = #tpu.core_type<tc>, window_params = [{transform_indices = @transform_0, window_bounds = array<i64: 16, 128>}, {pipeline_mode = #tpu.pipeline_mode<synchronous>, transform_indices = @transform_1, window_bounds = array<i64: 128, 8>}, {pipeline_mode = #tpu.pipeline_mode<synchronous>, transform_indices = @transform_2, window_bounds = array<i64: 8, 128>}, {pipeline_mode = #tpu.pipeline_mode<synchronous>, transform_indices = @transform_3, window_bounds = array<i64: 1, 128>}, {transform_indices = @transform_4, window_bounds = array<i64: 16, 128>}]} {
    %c0 = arith.constant 0 : index
    %c0_0 = arith.constant 0 : index
    %0 = vector.load %arg1[%c0, %c0_0] : memref<16x128xf32, #tpu.memory_space<vmem>>, vector<16x128xf32>
    %c0_1 = arith.constant 0 : index
    %c0_2 = arith.constant 0 : index
    %1 = vector.load %arg2[%c0_1, %c0_2] : memref<128x8xf32, #tpu.memory_space<vmem>>, vector<128x8xf32>
    %cst = arith.constant dense<0.000000e+00> : vector<16x8xf32>
    %2 = tpu.matmul %0, %1, %cst {dimension_numbers = #tpu.dot_dimension_numbers<[1], [0], [0], [1], [0, 0, 1, 1], [], []>} : vector<16x128xf32>, vector<128x8xf32>, vector<16x8xf32> -> vector<16x8xf32>
    %c0_3 = arith.constant 0 : index
    %c0_4 = arith.constant 0 : index
    %3 = vector.load %arg3[%c0_3, %c0_4] : memref<8x128xf32, #tpu.memory_space<vmem>>, vector<8x128xf32>
    %cst_5 = arith.constant dense<0.000000e+00> : vector<16x128xf32>
    %4 = tpu.matmul %2, %3, %cst_5 {dimension_numbers = #tpu.dot_dimension_numbers<[1], [0], [0], [1], [0, 0, 1, 1], [], []>} : vector<16x8xf32>, vector<8x128xf32>, vector<16x128xf32> -> vector<16x128xf32>
    %c0_6 = arith.constant 0 : index
    %c0_7 = arith.constant 0 : index
    %5 = vector.load %arg4[%c0_6, %c0_7] : memref<1x128xf32, #tpu.memory_space<vmem>>, vector<1x128xf32>
    %6 = vector.broadcast %5 : vector<1x128xf32> to vector<16x128xf32>
    %7 = arith.addf %4, %6 : vector<16x128xf32>
    %8 = arith.addf %7, %0 : vector<16x128xf32>
    %c0_8 = arith.constant 0 : index
    %c0_9 = arith.constant 0 : index
    %9 = vector.load %arg5[%c0_8, %c0_9] : memref<16x128xf32, #tpu.memory_space<vmem>>, vector<16x128xf32>
    tpu.vector_store %arg5[%c0_8, %c0_9], %8 {strides = array<i32>} : memref<16x128xf32, #tpu.memory_space<vmem>>, vector<16x128xf32>,
    return
  }
  func.func @transform_0(%arg0: i32) -> (i32, i32) {
    %c0_i32 = arith.constant 0 : i32
    %c0_i32_0 = arith.constant 0 : i32
    return %arg0, %c0_i32 : i32, i32
  }
  func.func @transform_1(%arg0: i32) -> (i32, i32) {
    %c0_i32 = arith.constant 0 : i32
    %c0_i32_0 = arith.constant 0 : i32
    %c0_i32_1 = arith.constant 0 : i32
    return %c0_i32, %c0_i32_0 : i32, i32
  }
  func.func @transform_2(%arg0: i32) -> (i32, i32) {
    %c0_i32 = arith.constant 0 : i32
    %c0_i32_0 = arith.constant 0 : i32
    %c0_i32_1 = arith.constant 0 : i32
    return %c0_i32, %c0_i32_0 : i32, i32
  }
  func.func @transform_3(%arg0: i32) -> (i32, i32) {
    %c0_i32 = arith.constant 0 : i32
    %c0_i32_0 = arith.constant 0 : i32
    %c0_i32_1 = arith.constant 0 : i32
    return %c0_i32, %c0_i32_0 : i32, i32
  }
  func.func @transform_4(%arg0: i32) -> (i32, i32) {
    %c0_i32 = arith.constant 0 : i32
    %c0_i32_0 = arith.constant 0 : i32
    return %arg0, %c0_i32 : i32, i32
  }
}

</mosaic_0001>

<bundles_post_ra>
// kernel: tpu_custom_call.1
= control target key start
LH: loop header
LB: loop body
LE: loop exit
PB: predicated region body
PF: predicated region fallthrough
CT: control target
= control target key end

     0   :  { %s401_s0 = inlined_call_operand.vmem [shape: f32[16,128], index: 0, kind: input, shape index: {}]   ;;  %s402_s1 = inlined_call_operand.vmem [shape: f32[128,8], index: 1, kind: input, shape index: {}]   ;;  %s403_s2 = inlined_call_operand.vmem [shape: f32[8,128], index: 2, kind: input, shape index: {}]   ;;  %s404_s3 = inlined_call_operand.vmem [shape: f32[1,128], index: 3, kind: input, shape index: {}]   ;;  %s405_s4 = inlined_call_operand.hbm [shape: f32[16,128], index: 4, kind: output, shape index: {}]  }
   0x1   :  { %v35_v0 = vld [vmem:[%s402_s1 + $0x78] sm:$0xff]  ;;  %v34_v1 = vld [vmem:[%s402_s1 + $0x70] sm:$0xff]  ;;  %v33_v2 = vld [vmem:[%s402_s1 + $0x68] sm:$0xff] }
   0x2   :  { %245 = vmatprep.subr.mxu0 %v35_v0  ;;  %v32_v3 = vld [vmem:[%s402_s1 + $0x60] sm:$0xff]  ;;  %v31_v5 = vld [vmem:[%s402_s1 + $0x58] sm:$0xff] }
   0x3   :  { %246 = vmatpush3.msra.mxu0 %v35_v0  ;;  %v18_v4 = vld [vmem:[%s401_s0] sm:$0xff] }
   0x4   :  { %247 = vmatprep.subr.mxu0 %v34_v1  ;;  %277 = vmatprep.mubr.f32.mxu0 %v18_v4 }
   0x5   :  { %248 = vmatpush3.msra.mxu0 %v34_v1 }
   0x6   :  { %249 = vmatprep.subr.mxu0 %v33_v2 }
   0x7   :  { %250 = vmatpush3.msra.mxu0 %v33_v2 }
   0x8   :  { %9 = vsyncpa [#allocation3], 0  ;;  %251 = vmatprep.subr.mxu0 %v32_v3  ;;  %v30_v6 = vld [vmem:[%s402_s1 + $0x50] sm:$0xff]  ;;  %v29_v7 = vld [vmem:[%s402_s1 + $0x48] sm:$0xff]  ;;  %vm119_vm0 = vcmask 64512  }
   0x9   :  { %252 = vmatpush3.msra.mxu0 %v32_v3  ;;  %v28_v8 = vld [vmem:[%s402_s1 + $0x40] sm:$0xff]  ;;  %v27_v9 = vld [vmem:[%s402_s1 + $0x38] sm:$0xff]  ;;  %v26_v10 = vld [vmem:[%s402_s1 + $0x30] sm:$0xff] }
   0xa   :  { %253 = vmatprep.subr.mxu0 %v31_v5  ;;  %v25_v11 = vld [vmem:[%s402_s1 + $0x28] sm:$0xff]  ;;  %v24_v12 = vld [vmem:[%s402_s1 + $0x20] sm:$0xff]  ;;  %v23_v13 = vld [vmem:[%s402_s1 + $0x18] sm:$0xff] }
   0xb   :  { %254 = vmatpush3.msra.mxu0 %v31_v5  ;;  %v22_v14 = vld [vmem:[%s402_s1 + $0x10] sm:$0xff]  ;;  %v21_v15 = vld [vmem:[%s402_s1 + $0x8] sm:$0xff]  ;;  %v20_v16 = vld [vmem:[%s402_s1] sm:$0xff] }
   0xc   :  { %255 = vmatprep.subr.mxu0 %v30_v6  ;;  %v19_v17 = vld [vmem:[%s401_s0 + $0x8] sm:$0xff]  ;;  %v111_v18 = vld [vmem:[%s403_s2] sm:$0xff]  ;;  %s310_s0 = smov [#allocation2]  }
   0xd   :  { %256 = vmatpush3.msra.mxu0 %v30_v6  ;;  %280 = vmatprep.subr.mxu1 %v111_v18  ;;  %v221_v21 = vld [vmem:[%s404_s3] ss:$0 sm:$0xff]  ;;  %s210_s28 = sshll.u32 %s310_s0, 4  ;;  %s211_s28 = int_to_ptr.vmem [resolvable:$true] %s210_s28 }
   0xe   :  { %257 = vmatprep.subr.mxu0 %v29_v7  ;;  %281 = vmatpush3.msra.mxu1 %v111_v18  ;;  %s288_s2 = scalar_lea.vmem %s211_s28, 256  ;;  %p293_p1 = scmp.lt.s32.totalorder %s211_s28, %s211_s28 }
   0xf   :  { %258 = vmatpush3.msra.mxu0 %v29_v7  ;;  %p289_p0 = scmp.ne.s32.totalorder %s211_s28, %s288_s2  ;;  %p294_p2 = scmp.lt.s32.totalorder %s288_s2, %s288_s2 }
  0x10   :  { %259 = vmatprep.subr.mxu0 %v28_v8 }
  0x11   :  { %260 = vmatpush3.msra.mxu0 %v28_v8  ;;  %p295_p3 = por %p294_p2, %p293_p1 }
  0x12   :  { %261 = vmatprep.subr.mxu0 %v27_v9 }
  0x13   :  { %262 = vmatpush3.msra.mxu0 %v27_v9  ;;  %p296_p4 = pnand %p295_p3, %p289_p0 }
  0x14   :  { %263 = vmatprep.subr.mxu0 %v26_v10 }
  0x15   :  { %264 = vmatpush3.msra.mxu0 %v26_v10 }
  0x16   :  { %265 = vmatprep.subr.mxu0 %v25_v11 }
  0x17   :  { %266 = vmatpush3.msra.mxu0 %v25_v11 }
  0x18   :  { %267 = vmatprep.subr.mxu0 %v24_v12 }
  0x19   :  { %268 = vmatpush3.msra.mxu0 %v24_v12 }
  0x1a   :  { %269 = vmatprep.subr.mxu0 %v23_v13 }
  0x1b   :  { %270 = vmatpush3.msra.mxu0 %v23_v13 }
  0x1c   :  { %271 = vmatprep.subr.mxu0 %v22_v14 }
  0x1d   :  { %272 = vmatpush3.msra.mxu0 %v22_v14 }
  0x1e   :  { %273 = vmatprep.subr.mxu0 %v21_v15 }
  0x1f   :  { %274 = vmatpush3.msra.mxu0 %v21_v15 }
  0x20   :  { %275 = vmatprep.subr.mxu0 %v20_v16 }
  0x21   :  { %276 = vmatpush3.msra.mxu0 %v20_v16 }
  0x22   :  { %278 = vmatmul.mubr.f32.vlgmr.msra.gmra.mxu0 %v19_v17 }
  0xe2   :  { %v279_v19 = vpop.f32.mrf.mxu0 }
  0xe4   :  { %v102_v20 = vpop.f32.mrf.mxu0 }
  0xe5   :  { %282 = vmatprep.mubr.msk.f32.mxu1 %vm119_vm0, %v102_v20 }
  0xe6   :  { %283 = vmatmul.mubr.msk.f32.vlgmr.msra.gmra.mxu1 %vm119_vm0, %v279_v19 }
 0x1a6   :  { %v284_v22 = vpop.f32.mrf.mxu1 }
 0x1a7   :  { %v198_v23 = vadd.f32 %v284_v22, %v221_v21 }
 0x1a8   :  { %v192_v24 = vpop.f32.mrf.mxu1 }
 0x1a9   :  { %v202_v25 = vadd.f32 %v198_v23, %v19_v17  ;;  %v193_v26 = vadd.f32 %v221_v21, %v192_v24 }
 0x1ab   :  { %204 = vst [vmem:[#allocation2 + $0x8] sm:$0xff] %v202_v25  ;;  %v201_v27 = vadd.f32 %v193_v26, %v18_v4 }
 0x1ad   :  { %203 = vst [vmem:[#allocation2] sm:$0xff] %v201_v27 }
 0x1ae   :  { %299 = shalt.err (!%p296_p4)
}
 0x1af   :  { %s311_s29 = smov 128   ;;  %s312_s3 = smov 8  }
 0x1b0   :  { %216 = dma.vmem_to_hbm [thread:$0]  %s211_s28, 256, %s405_s4, [#allocation3], %s311_s29, %s311_s29, %s312_s3  }
 0x1b1   :  { %308 = dma.done.wait [#allocation3], 256  }
 0x1b2   :  { %309 = vsyncadd [#allocation3], 4294967040 }
 0x1b3   :  { %220 = vsyncpa [#allocation3], 1 }

// kernel: tpu_custom_call.1
= control target key start
LH: loop header
LB: loop body
LE: loop exit
PB: predicated region body
PF: predicated region fallthrough
CT: control target
= control target key end

     0   :  { %s401_s0 = inlined_call_operand.vmem [shape: f32[16,128], index: 0, kind: input, shape index: {}]   ;;  %s402_s1 = inlined_call_operand.vmem [shape: f32[128,8], index: 1, kind: input, shape index: {}]   ;;  %s403_s2 = inlined_call_operand.vmem [shape: f32[8,128], index: 2, kind: input, shape index: {}]   ;;  %s404_s3 = inlined_call_operand.vmem [shape: f32[1,128], index: 3, kind: input, shape index: {}]   ;;  %s405_s4 = inlined_call_operand.hbm [shape: f32[16,128], index: 4, kind: output, shape index: {}]  }
   0x1   :  { %v35_v0 = vld [vmem:[%s402_s1 + $0x78] sm:$0xff]  ;;  %v34_v1 = vld [vmem:[%s402_s1 + $0x70] sm:$0xff]  ;;  %v33_v2 = vld [vmem:[%s402_s1 + $0x68] sm:$0xff] }
   0x2   :  { %245 = vmatprep.subr.mxu0 %v35_v0  ;;  %v32_v3 = vld [vmem:[%s402_s1 + $0x60] sm:$0xff]  ;;  %v31_v5 = vld [vmem:[%s402_s1 + $0x58] sm:$0xff] }
   0x3   :  { %246 = vmatpush3.msra.mxu0 %v35_v0  ;;  %v18_v4 = vld [vmem:[%s401_s0] sm:$0xff] }
   0x4   :  { %247 = vmatprep.subr.mxu0 %v34_v1  ;;  %277 = vmatprep.mubr.f32.mxu0 %v18_v4 }
   0x5   :  { %248 = vmatpush3.msra.mxu0 %v34_v1 }
   0x6   :  { %249 = vmatprep.subr.mxu0 %v33_v2 }
   0x7   :  { %250 = vmatpush3.msra.mxu0 %v33_v2 }
   0x8   :  { %9 = vsyncpa [#allocation3], 0  ;;  %251 = vmatprep.subr.mxu0 %v32_v3  ;;  %v30_v6 = vld [vmem:[%s402_s1 + $0x50] sm:$0xff]  ;;  %v29_v7 = vld [vmem:[%s402_s1 + $0x48] sm:$0xff]  ;;  %vm119_vm0 = vcmask 64512  }
   0x9   :  { %252 = vmatpush3.msra.mxu0 %v32_v3  ;;  %v28_v8 = vld [vmem:[%s402_s1 + $0x40] sm:$0xff]  ;;  %v27_v9 = vld [vmem:[%s402_s1 + $0x38] sm:$0xff]  ;;  %v26_v10 = vld [vmem:[%s402_s1 + $0x30] sm:$0xff] }
   0xa   :  { %253 = vmatprep.subr.mxu0 %v31_v5  ;;  %v25_v11 = vld [vmem:[%s402_s1 + $0x28] sm:$0xff]  ;;  %v24_v12 = vld [vmem:[%s402_s1 + $0x20] sm:$0xff]  ;;  %v23_v13 = vld [vmem:[%s402_s1 + $0x18] sm:$0xff] }
   0xb   :  { %254 = vmatpush3.msra.mxu0 %v31_v5  ;;  %v22_v14 = vld [vmem:[%s402_s1 + $0x10] sm:$0xff]  ;;  %v21_v15 = vld [vmem:[%s402_s1 + $0x8] sm:$0xff]  ;;  %v20_v16 = vld [vmem:[%s402_s1] sm:$0xff] }
   0xc   :  { %255 = vmatprep.subr.mxu0 %v30_v6  ;;  %v19_v17 = vld [vmem:[%s401_s0 + $0x8] sm:$0xff]  ;;  %v111_v18 = vld [vmem:[%s403_s2] sm:$0xff]  ;;  %s310_s0 = smov [#allocation2]  }
   0xd   :  { %256 = vmatpush3.msra.mxu0 %v30_v6  ;;  %280 = vmatprep.subr.mxu1 %v111_v18  ;;  %v221_v21 = vld [vmem:[%s404_s3] ss:$0 sm:$0xff]  ;;  %s210_s28 = sshll.u32 %s310_s0, 4  ;;  %s211_s28 = int_to_ptr.vmem [resolvable:$true] %s210_s28 }
   0xe   :  { %257 = vmatprep.subr.mxu0 %v29_v7  ;;  %281 = vmatpush3.msra.mxu1 %v111_v18  ;;  %s288_s2 = scalar_lea.vmem %s211_s28, 256  ;;  %p293_p1 = scmp.lt.s32.totalorder %s211_s28, %s211_s28 }
   0xf   :  { %258 = vmatpush3.msra.mxu0 %v29_v7  ;;  %p289_p0 = scmp.ne.s32.totalorder %s211_s28, %s288_s2  ;;  %p294_p2 = scmp.lt.s32.totalorder %s288_s2, %s288_s2 }
  0x10   :  { %259 = vmatprep.subr.mxu0 %v28_v8 }
  0x11   :  { %260 = vmatpush3.msra.mxu0 %v28_v8  ;;  %p295_p3 = por %p294_p2, %p293_p1 }
  0x12   :  { %261 = vmatprep.subr.mxu0 %v27_v9 }
  0x13   :  { %262 = vmatpush3.msra.mxu0 %v27_v9  ;;  %p296_p4 = pnand %p295_p3, %p289_p0 }
  0x14   :  { %263 = vmatprep.subr.mxu0 %v26_v10 }
  0x15   :  { %264 = vmatpush3.msra.mxu0 %v26_v10 }
  0x16   :  { %265 = vmatprep.subr.mxu0 %v25_v11 }
  0x17   :  { %266 = vmatpush3.msra.mxu0 %v25_v11 }
  0x18   :  { %267 = vmatprep.subr.mxu0 %v24_v12 }
  0x19   :  { %268 = vmatpush3.msra.mxu0 %v24_v12 }
  0x1a   :  { %269 = vmatprep.subr.mxu0 %v23_v13 }
  0x1b   :  { %270 = vmatpush3.msra.mxu0 %v23_v13 }
  0x1c   :  { %271 = vmatprep.subr.mxu0 %v22_v14 }
  0x1d   :  { %272 = vmatpush3.msra.mxu0 %v22_v14 }
  0x1e   :  { %273 = vmatprep.subr.mxu0 %v21_v15 }
  0x1f   :  { %274 = vmatpush3.msra.mxu0 %v21_v15 }
  0x20   :  { %275 = vmatprep.subr.mxu0 %v20_v16 }
  0x21   :  { %276 = vmatpush3.msra.mxu0 %v20_v16 }
  0x22   :  { %278 = vmatmul.mubr.f32.vlgmr.msra.gmra.mxu0 %v19_v17 }
  0xe2   :  { %v279_v19 = vpop.f32.mrf.mxu0 }
  0xe4   :  { %v102_v20 = vpop.f32.mrf.mxu0 }
  0xe5   :  { %282 = vmatprep.mubr.msk.f32.mxu1 %vm119_vm0, %v102_v20 }
  0xe6   :  { %283 = vmatmul.mubr.msk.f32.vlgmr.msra.gmra.mxu1 %vm119_vm0, %v279_v19 }
 0x1a6   :  { %v284_v22 = vpop.f32.mrf.mxu1 }
 0x1a7   :  { %v198_v23 = vadd.f32 %v284_v22, %v221_v21 }
 0x1a8   :  { %v192_v24 = vpop.f32.mrf.mxu1 }
 0x1a9   :  { %v202_v25 = vadd.f32 %v198_v23, %v19_v17  ;;  %v193_v26 = vadd.f32 %v221_v21, %v192_v24 }
 0x1ab   :  { %204 = vst [vmem:[#allocation2 + $0x8] sm:$0xff] %v202_v25  ;;  %v201_v27 = vadd.f32 %v193_v26, %v18_v4 }
 0x1ad   :  { %203 = vst [vmem:[#allocation2] sm:$0xff] %v201_v27 }
 0x1ae   :  { %299 = shalt.err (!%p296_p4)
}
 0x1af   :  { %s311_s29 = smov 128   ;;  %s312_s3 = smov 8  }
 0x1b0   :  { %216 = dma.vmem_to_hbm [thread:$0]  %s211_s28, 256, %s405_s4, [#allocation3], %s311_s29, %s311_s29, %s312_s3  }
 0x1b1   :  { %308 = dma.done.wait [#allocation3], 256  }
 0x1b2   :  { %309 = vsyncadd [#allocation3], 4294967040 }
 0x1b3   :  { %220 = vsyncpa [#allocation3], 1 }

</bundles_post_ra>
